<compile_context>
chip_gen: v7x
topology: tpu7x:2x2x1
jax: 0.10.0
libtpu: 0.0.40
codegen_flags: <defaults>
</compile_context>

<pallas_src>
import jax
import jax.numpy as jnp
from jax.experimental import pallas as pl
from jax.experimental.pallas import tpu as pltpu


def _round_up(x, m):
    return (x + m - 1) // m * m


# ---------------------------------------------------------------------------
# Kernel: (tile_m, CKKp) @ (CKKp, Ep) + bias -> (tile_m, Ep), f32 accumulation
# ---------------------------------------------------------------------------
def _patch_embed_kernel(p_ref, w_ref, b_ref, o_ref):
    acc = jnp.dot(p_ref[...], w_ref[...], preferred_element_type=jnp.float32)
    o_ref[...] = (acc + b_ref[...]).astype(o_ref.dtype)


# ---------------------------------------------------------------------------
# Wrapper
# ---------------------------------------------------------------------------
def patch_embed_forward(x, w, b, *, patch_size, stride, padding,
                        compute_dtype=jnp.bfloat16):
    """PatchEmbed.forward. Returns (tokens (B, Hp*Wp, E), (Hp, Wp))."""
    B, C, H, W = x.shape
    E = w.shape[0]
    K = patch_size

    # Conv zero-padding (tiny input; single XLA pad).
    x_pad = jnp.pad(x, ((0, 0), (0, 0), (padding, padding), (padding, padding)))
    Hpad, Wpad = H + 2 * padding, W + 2 * padding
    Hp = (Hpad - K) // stride + 1
    Wp = (Wpad - K) // stride + 1
    P = Hp * Wp
    CKK = C * K * K

    # im2col -> (B*P, C*K*K). Default ratio=1 means stride == kernel size, so
    # patches are non-overlapping and a reshape/transpose suffices.
    # TODO(synk): for large inputs, move this rearrangement into the kernel
    # (per-row-tile contiguous (C, K, Wp*K) strips via BlockSpec) to avoid the
    # extra HBM pass for the materialized patches intermediate.
    if stride == K:
        xc = x_pad[:, :, : Hp * K, : Wp * K]
        patches = xc.reshape(B, C, Hp, K, Wp, K).transpose(0, 2, 4, 1, 3, 5)
    else:
        # TODO(synk): ratio > 1 (overlapping patches): gather in-kernel via
        # PrefetchScalarGridSpec row offsets / pl.ds from x_pad kept in HBM
        # instead of this XLA gather that materializes a ratio^2-larger array.
        rows = (jnp.arange(Hp) * stride)[:, None] + jnp.arange(K)[None, :]
        cols = (jnp.arange(Wp) * stride)[:, None] + jnp.arange(K)[None, :]
        patches = x_pad[:, :, rows[:, None, :, None], cols[None, :, None, :]]
        patches = patches.transpose(0, 2, 3, 1, 4, 5)      # (B, Hp, Wp, C, K, K)
    patches = patches.reshape(B * P, CKK)                  # batch folded into M

    # Aligned, lane-dense shapes.
    M = B * P
    CKKp = _round_up(CKK, 128)                 # contraction dim -> full lanes
    Ep = _round_up(E, 128)                     # output dim -> full lanes
    tile_m = 256 if M >= 256 else _round_up(M, 8)
    Mp = _round_up(M, tile_m)
    # NOTE: for real ViT configs (CKK=768, E=768-1024, large B) keep
    # 2 * tile_m * (CKKp + Ep) * 2B + CKKp * Ep * 2B well under v7x's 64 MiB VMEM.

    # Zero-pad operands (padded weight rows/cols are zero -> result unchanged)
    # and cast to bf16 for the MXU.
    patches_p = jnp.zeros((Mp, CKKp), dtype=compute_dtype)
    patches_p = patches_p.at[:M, :CKK].set(patches.astype(compute_dtype))

    # Conv weight (E, C, K, K) -> (CKK, E): same (C, kh, kw) flatten order as
    # the conv, so p @ W2 + b is numerically the conv output.
    w2 = w.reshape(E, CKK).T
    w2p = jnp.zeros((CKKp, Ep), dtype=compute_dtype)
    w2p = w2p.at[:CKK, :E].set(w2.astype(compute_dtype))

    b2p = jnp.zeros((1, Ep), dtype=jnp.float32)
    b2p = b2p.at[0, :E].set(b.astype(jnp.float32))

    grid_m = Mp // tile_m
    tokens = pl.pallas_call(
        _patch_embed_kernel,
        out_shape=jax.ShapeDtypeStruct((Mp, Ep), x.dtype),
        grid=(grid_m,),
        in_specs=[
            pl.BlockSpec((tile_m, CKKp), lambda i: (i, 0)),  # M row-tile of patches
            pl.BlockSpec((CKKp, Ep), lambda i: (0, 0)),      # weights (resident)
            pl.BlockSpec((1, Ep), lambda i: (0, 0)),         # bias (resident)
        ],
        out_specs=pl.BlockSpec((tile_m, Ep), lambda i: (i, 0)),
        compiler_params=pltpu.CompilerParams(
            dimension_semantics=("parallel",)),
    )(patches_p, w2p, b2p)

    tokens = tokens[:M, :E].reshape(B, P, E)
    return tokens, (Hp, Wp)


# ---------------------------------------------------------------------------
# Pure-JAX reference (verification only)
# ---------------------------------------------------------------------------
def patch_embed_reference(x, w, b, *, stride, padding):
    y = jax.lax.conv_general_dilated(
        x, w, window_strides=(stride, stride),
        padding=((padding, padding), (padding, padding)),
        dimension_numbers=("NCHW", "OIHW", "NCHW"))
    y = y + b[None, :, None, None]
    B, E, Hp, Wp = y.shape
    return y.reshape(B, E, Hp * Wp).transpose(0, 2, 1), (Hp, Wp)


# ---------------------------------------------------------------------------
# Main
# ---------------------------------------------------------------------------
if __name__ == "__main__":
    # Small config consistent with PatchEmbed: 16x16 image, patch 4, ratio 1.
    B, C, H, W = 2, 3, 16, 16
    patch_size = 4
    ratio = 1
    embed_dim = 128                          # lane-dense output last dim
    stride = patch_size // ratio             # 4
    padding = 4 + 2 * (ratio // 2 - 1)       # 2, exactly as in the module

    key = jax.random.PRNGKey(0)
    k1, k2, k3 = jax.random.split(key, 3)
    x = jax.random.normal(k1, (B, C, H, W), dtype=jnp.float32)
    w = jax.random.normal(k2, (embed_dim, C, patch_size, patch_size),
                          dtype=jnp.float32) * 0.05
    b = jax.random.normal(k3, (embed_dim,), dtype=jnp.float32) * 0.05

    out, (Hp, Wp) = patch_embed_forward(
        x, w, b, patch_size=patch_size, stride=stride, padding=padding)
    out = jax.block_until_ready(out)

    ref, (Hp_r, Wp_r) = patch_embed_reference(x, w, b, stride=stride, padding=padding)
    assert (Hp, Wp) == (Hp_r, Wp_r), "spatial shape mismatch"
    assert out.shape == (B, Hp * Wp, embed_dim), "output shape mismatch"
    # bf16 operands (f32 accumulation) vs f32 conv reference -> loosened tol.
    assert jnp.allclose(out, ref, atol=2e-2, rtol=2e-2), "mismatch vs reference"

    print("KERNEL_OK")
</pallas_src>

<mosaic_0001>
module attributes {stable_mosaic.version = 11 : i64} {
  func.func @_patch_embed_kernel(%arg0: i32, %arg1: memref<56x128xbf16, #tpu.memory_space<vmem>>, %arg2: memref<128x128xbf16, #tpu.memory_space<vmem>>, %arg3: memref<1x128xf32, #tpu.memory_space<vmem>>, %arg4: memref<56x128xf32, #tpu.memory_space<vmem>>) attributes {dimension_semantics = [#tpu.dimension_semantics<parallel>], iteration_bounds = array<i64: 1>, scalar_prefetch = 0 : i64, scratch_operands = 0 : i64, tpu.core_type = #tpu.core_type<tc>, window_params = [{transform_indices = @transform_0, window_bounds = array<i64: 56, 128>}, {pipeline_mode = #tpu.pipeline_mode<synchronous>, transform_indices = @transform_1, window_bounds = array<i64: 128, 128>}, {pipeline_mode = #tpu.pipeline_mode<synchronous>, transform_indices = @transform_2, window_bounds = array<i64: 1, 128>}, {transform_indices = @transform_3, window_bounds = array<i64: 56, 128>}]} {
    %c0 = arith.constant 0 : index
    %c0_0 = arith.constant 0 : index
    %0 = vector.load %arg1[%c0, %c0_0] : memref<56x128xbf16, #tpu.memory_space<vmem>>, vector<56x128xbf16>
    %c0_1 = arith.constant 0 : index
    %c0_2 = arith.constant 0 : index
    %1 = vector.load %arg2[%c0_1, %c0_2] : memref<128x128xbf16, #tpu.memory_space<vmem>>, vector<128x128xbf16>
    %cst = arith.constant dense<0.000000e+00> : vector<56x128xf32>
    %2 = tpu.matmul %0, %1, %cst {dimension_numbers = #tpu.dot_dimension_numbers<[1], [0], [0], [1], [0, 0, 1, 1], [], []>} : vector<56x128xbf16>, vector<128x128xbf16>, vector<56x128xf32> -> vector<56x128xf32>
    %c0_3 = arith.constant 0 : index
    %c0_4 = arith.constant 0 : index
    %3 = vector.load %arg3[%c0_3, %c0_4] : memref<1x128xf32, #tpu.memory_space<vmem>>, vector<1x128xf32>
    %4 = vector.broadcast %3 : vector<1x128xf32> to vector<56x128xf32>
    %5 = arith.addf %2, %4 : vector<56x128xf32>
    %c0_5 = arith.constant 0 : index
    %c0_6 = arith.constant 0 : index
    %6 = vector.load %arg4[%c0_5, %c0_6] : memref<56x128xf32, #tpu.memory_space<vmem>>, vector<56x128xf32>
    tpu.vector_store %arg4[%c0_5, %c0_6], %5 {strides = array<i32>} : memref<56x128xf32, #tpu.memory_space<vmem>>, vector<56x128xf32>,
    return
  }
  func.func @transform_0(%arg0: i32) -> (i32, i32) {
    %c0_i32 = arith.constant 0 : i32
    %c0_i32_0 = arith.constant 0 : i32
    return %arg0, %c0_i32 : i32, i32
  }
  func.func @transform_1(%arg0: i32) -> (i32, i32) {
    %c0_i32 = arith.constant 0 : i32
    %c0_i32_0 = arith.constant 0 : i32
    %c0_i32_1 = arith.constant 0 : i32
    return %c0_i32, %c0_i32_0 : i32, i32
  }
  func.func @transform_2(%arg0: i32) -> (i32, i32) {
    %c0_i32 = arith.constant 0 : i32
    %c0_i32_0 = arith.constant 0 : i32
    %c0_i32_1 = arith.constant 0 : i32
    return %c0_i32, %c0_i32_0 : i32, i32
  }
  func.func @transform_3(%arg0: i32) -> (i32, i32) {
    %c0_i32 = arith.constant 0 : i32
    %c0_i32_0 = arith.constant 0 : i32
    return %arg0, %c0_i32 : i32, i32
  }
}

</mosaic_0001>

<bundles_post_ra>
// kernel: tpu_custom_call.1
= control target key start
LH: loop header
LB: loop body
LE: loop exit
PB: predicated region body
PF: predicated region fallthrough
CT: control target
= control target key end

     0   :  { %8 = vsyncpa [#allocation3], 0  ;;  %s455_s0 = inlined_call_operand.hbm [shape: bf16[56,128], index: 0, kind: input, shape index: {}]   ;;  %s456_s1 = inlined_call_operand.hbm [shape: bf16[128,128], index: 1, kind: input, shape index: {}]   ;;  %s457_s2 = inlined_call_operand.vmem [shape: f32[1,128], index: 2, kind: input, shape index: {}]   ;;  %s458_s3 = inlined_call_operand.hbm [shape: f32[56,128], index: 3, kind: output, shape index: {}]  }
   0x1   :  { %9 = vsyncpa [#allocation6], 0 }
   0x2   :  { %10 = vsyncpa [#allocation4], 0  ;;  %s389_s12 = smov [#allocation2]   ;;  %s317_s16 = scalar_lea.hbm %s455_s0, 448 }
   0x3   :  { %s16_s13 = sshll.u32 %s389_s12, 4  ;;  %p318_p0 = scmp.ne.s32.totalorder %s455_s0, %s317_s16  ;;  %s17_s13 = int_to_ptr.vmem [resolvable:$true] %s16_s13 }
   0x4   :  { %p321_p1 = scmp.lt.u32.totalorder %s317_s16, %s455_s0 }
   0x6   :  { %p323_p2 = pnand %p321_p1, %p318_p0 }
   0x8   :  { %326 = shalt.err (!%p323_p2)
}
   0x9   :  { %s327_s21 = scalar_lea.vmem %s17_s13, 448  ;;  %p332_p4 = scmp.lt.s32.totalorder %s17_s13, %s17_s13 }
   0xa   :  { %p328_p3 = scmp.ne.s32.totalorder %s17_s13, %s327_s21  ;;  %p333_p5 = scmp.lt.s32.totalorder %s327_s21, %s327_s21 }
   0xc   :  { %p334_p6 = por %p333_p5, %p332_p4 }
   0xe   :  { %p335_p7 = pnand %p334_p6, %p328_p3 }
  0x10   :  { %338 = shalt.err (!%p335_p7)
}
  0x11   :  { %s390_s22 = smov 64   ;;  %s391_s23 = smov 4  }
  0x12   :  { %22 = dma.hbm_to_vmem [thread:$0]  %s455_s0, 448, %s17_s13, [#allocation3], %s390_s22, %s390_s22, %s391_s23  }
  0x13   :  { %s392_s26 = smov [#allocation5]   ;;  %s339_s30 = scalar_lea.hbm %s456_s1, 1024 }
  0x14   :  { %s28_s27 = sshll.u32 %s392_s26, 4  ;;  %p340_p8 = scmp.ne.s32.totalorder %s456_s1, %s339_s30  ;;  %s29_s27 = int_to_ptr.vmem [resolvable:$true] %s28_s27 }
  0x15   :  { %p343_p9 = scmp.lt.u32.totalorder %s339_s30, %s456_s1 }
  0x17   :  { %p345_p10 = pnand %p343_p9, %p340_p8 }
  0x19   :  { %348 = shalt.err (!%p345_p10)
}
  0x1a   :  { %s349_s8 = scalar_lea.vmem %s29_s27, 1024  ;;  %p354_p12 = scmp.lt.s32.totalorder %s29_s27, %s29_s27 }
  0x1b   :  { %p350_p11 = scmp.ne.s32.totalorder %s29_s27, %s349_s8  ;;  %p355_p13 = scmp.lt.s32.totalorder %s349_s8, %s349_s8 }
  0x1d   :  { %p356_p0 = por %p355_p13, %p354_p12 }
  0x1f   :  { %p357_p1 = pnand %p356_p0, %p350_p11 }
  0x21   :  { %360 = shalt.err (!%p357_p1)
}
  0x22   :  { %34 = dma.hbm_to_vmem [thread:$0]  %s456_s1, 1024, %s29_s27, [#allocation6], %s390_s22, %s390_s22, %s391_s23  }
  0x23   :  { %383 = dma.done.wait [#allocation3], 448  }
  0x24   :  { %384 = vsyncadd [#allocation3], 4294966848 }
  0x25   :  { %385 = dma.done.wait [#allocation6], 1024  }
  0x26   :  { %386 = vsyncadd [#allocation6], 4294966272  ;;  %v305_v0 = vld [vmem:[#allocation5] sm:$0xff]   ;;  %v306_v1 = vld [vmem:[#allocation5 + $0x8] sm:$0xff]   ;;  %s393_s11 = smov [#allocation7]  }
  0x27   :  { %258 = vmatprep.subr.bf16.mxu0 %v305_v0  ;;  %282 = vmatprep.subr.bf16.mxu1 %v305_v0  ;;  %v307_v2 = vld [vmem:[#allocation5 + $0x10] sm:$0xff]   ;;  %v308_v3 = vld [vmem:[#allocation5 + $0x18] sm:$0xff]   ;;  %v313_v4 = vld [vmem:[#allocation2] sm:$0xff]   ;;  %s220_s12 = sshll.u32 %s393_s11, 4  ;;  %s221_s12 = int_to_ptr.vmem [resolvable:$true] %s220_s12 }
  0x28   :  { %259 = vmatpush3.bf16.msra.mxu0 %v305_v0  ;;  %290 = vmatpush3.bf16.msra.mxu1 %v305_v0  ;;  %v314_v5 = vld [vmem:[#allocation2 + $0x10] sm:$0xff]   ;;  %v309_v6 = vld [vmem:[#allocation5 + $0x20] sm:$0xff]   ;;  %v310_v7 = vld [vmem:[#allocation5 + $0x28] sm:$0xff]   ;;  %p366_p3 = scmp.lt.s32.totalorder %s221_s12, %s221_s12 }
  0x29   :  { %260 = vmatprep.subr.bf16.mxu0 %v306_v1  ;;  %283 = vmatprep.subr.bf16.mxu1 %v306_v1  ;;  %v311_v8 = vld [vmem:[#allocation5 + $0x30] sm:$0xff]   ;;  %v312_v9 = vld [vmem:[#allocation5 + $0x38] sm:$0xff]   ;;  %v233_v12 = vld [vmem:[%s457_s2] ss:$0 sm:$0xff]  ;;  %s361_s2 = scalar_lea.vmem %s221_s12, 896 }
  0x2a   :  { %274 = vmatprep.mubr.bf16.mxu0 %v313_v4  ;;  %278 = vmatprep.mubr.bf16.mxu1 %v314_v5  ;;  %v315_v10 = vld [vmem:[#allocation2 + $0x8] sm:$0xff]   ;;  %v316_v11 = vld [vmem:[#allocation2 + $0x18] ss:$0 sps:$4 sm:$0xff]   ;;  %p362_p2 = scmp.ne.s32.totalorder %s221_s12, %s361_s2  ;;  %p367_p4 = scmp.lt.s32.totalorder %s361_s2, %s361_s2 }
  0x2c   :  { %261 = vmatpush3.bf16.msra.mxu0 %v306_v1  ;;  %291 = vmatpush3.bf16.msra.mxu1 %v306_v1  ;;  %p368_p5 = por %p367_p4, %p366_p3 }
  0x2d   :  { %262 = vmatprep.subr.bf16.mxu0 %v307_v2  ;;  %284 = vmatprep.subr.bf16.mxu1 %v307_v2 }
  0x2e   :  { %p369_p6 = pnand %p368_p5, %p362_p2 }
  0x30   :  { %263 = vmatpush3.bf16.msra.mxu0 %v307_v2  ;;  %292 = vmatpush3.bf16.msra.mxu1 %v307_v2 }
  0x31   :  { %264 = vmatprep.subr.bf16.mxu0 %v308_v3  ;;  %285 = vmatprep.subr.bf16.mxu1 %v308_v3 }
  0x34   :  { %265 = vmatpush3.bf16.msra.mxu0 %v308_v3  ;;  %293 = vmatpush3.bf16.msra.mxu1 %v308_v3 }
  0x35   :  { %266 = vmatprep.subr.bf16.mxu0 %v309_v6  ;;  %286 = vmatprep.subr.bf16.mxu1 %v309_v6 }
  0x38   :  { %267 = vmatpush3.bf16.msra.mxu0 %v309_v6  ;;  %294 = vmatpush3.bf16.msra.mxu1 %v309_v6 }
  0x39   :  { %268 = vmatprep.subr.bf16.mxu0 %v310_v7  ;;  %287 = vmatprep.subr.bf16.mxu1 %v310_v7 }
  0x3c   :  { %269 = vmatpush3.bf16.msra.mxu0 %v310_v7  ;;  %295 = vmatpush3.bf16.msra.mxu1 %v310_v7 }
  0x3d   :  { %270 = vmatprep.subr.bf16.mxu0 %v311_v8  ;;  %288 = vmatprep.subr.bf16.mxu1 %v311_v8 }
  0x40   :  { %271 = vmatpush3.bf16.msra.mxu0 %v311_v8  ;;  %296 = vmatpush3.bf16.msra.mxu1 %v311_v8 }
  0x41   :  { %272 = vmatprep.subr.bf16.mxu0 %v312_v9  ;;  %289 = vmatprep.subr.bf16.mxu1 %v312_v9 }
  0x44   :  { %273 = vmatpush3.bf16.msra.mxu0 %v312_v9  ;;  %297 = vmatpush3.bf16.msra.mxu1 %v312_v9 }
  0x47   :  { %275 = vmatmul.mubr.bf16.vlgmr.msra.gmra.mrb[0].mxu0 %v315_v10  ;;  %279 = vmatmul.mubr.bf16.vlgmr.msra.gmra.mrb[0].mxu1 %v316_v11 }
 0x11a   :  { %v276_v13 = vpop.f32.mrb[0].mxu0  ;;  %v280_v14 = vpop.f32.mrb[0].mxu1 }
 0x11b   :  { %v187_v15 = vadd.f32 %v276_v13, %v233_v12  ;;  %v203_v16 = vadd.f32 %v280_v14, %v233_v12  ;;  %v178_v17 = vpop.f32.mrb[1].mxu0  ;;  %v194_v18 = vpop.f32.mrb[1].mxu1 }
 0x11c   :  { %v179_v19 = vadd.f32 %v233_v12, %v178_v17  ;;  %v195_v20 = vadd.f32 %v233_v12, %v194_v18  ;;  %v277_v21 = vpop.f32.mrb[2].mxu0  ;;  %v281_v22 = vpop.f32.mrb[2].mxu1 }
 0x11d   :  { %210 = vst [vmem:[#allocation7 + $0x10] sm:$0xff] %v187_v15  ;;  %214 = vst [vmem:[#allocation7 + $0x30] sm:$0xff] %v203_v16  ;;  %v190_v23 = vadd.f32 %v277_v21, %v233_v12  ;;  %v181_v24 = vpop.f32.mrb[3].mxu0  ;;  %v197_v25 = vpop.f32.mrb[3].mxu1 }
 0x11e   :  { %208 = vst [vmem:[#allocation7] sm:$0xff] %v179_v19  ;;  %212 = vst [vmem:[#allocation7 + $0x20] sm:$0xff] %v195_v20  ;;  %v182_v26 = vadd.f32 %v233_v12, %v181_v24  ;;  %v198_v27 = vadd.f32 %v233_v12, %v197_v25 }
 0x11f   :  { %211 = vst [vmem:[#allocation7 + $0x18] sm:$0xff] %v190_v23 }
 0x120   :  { %209 = vst [vmem:[#allocation7 + $0x8] sm:$0xff] %v182_v26  ;;  %213 = vst [vmem:[#allocation7 + $0x28] sm:$0xff] %v198_v27 }
 0x121   :  { %372 = shalt.err (!%p369_p6)
}
 0x122   :  { %s373_s15 = scalar_lea.hbm %s458_s3, 896 }
 0x123   :  { %p374_p7 = scmp.ne.s32.totalorder %s458_s3, %s373_s15  ;;  %p377_p8 = scmp.lt.u32.totalorder %s373_s15, %s458_s3 }
 0x125   :  { %p379_p9 = pnand %p377_p8, %p374_p7 }
 0x127   :  { %382 = shalt.err (!%p379_p9)
}
 0x128   :  { %s394_s20 = smov 128   ;;  %s395_s21 = smov 8  }
 0x129   :  { %226 = dma.vmem_to_hbm [thread:$0]  %s221_s12, 896, %s458_s3, [#allocation4], %s394_s20, %s394_s20, %s395_s21  }
 0x12a   :  { %387 = dma.done.wait [#allocation4], 896  }
 0x12b   :  { %388 = vsyncadd [#allocation4], 4294966400 }
 0x12c   :  { %230 = vsyncpa [#allocation3], 1 }
 0x12d   :  { %231 = vsyncpa [#allocation6], 1 }
 0x12e   :  { %232 = vsyncpa [#allocation4], 1 }

</bundles_post_ra>
